<compile_context>
chip_gen: v6e
topology: v6e:2x2x1
jax: 0.10.0
libtpu: 0.0.40
codegen_flags: <defaults>
</compile_context>

<pallas_src>
import functools
import math

import jax
import jax.numpy as jnp
from jax import lax
from jax.experimental import pallas as pl
from jax.experimental.pallas import tpu as pltpu

_LANE = 128


def _apply_activation(acc, activation):
    if activation == "relu":
        return jnp.maximum(acc, 0.0)
    if activation == "tanh":
        return jnp.tanh(acc)
    if activation == "sigmoid":
        return jax.nn.sigmoid(acc)
    if activation == "leaky":
        return jnp.where(acc >= 0.0, acc, 0.01 * acc)
    if activation == "selu":
        alpha = 1.6732632423543772
        scale = 1.0507009873554805
        return scale * jnp.where(acc > 0.0, acc, alpha * (jnp.exp(acc) - 1.0))
    # "valid" -> identity
    return acc


# ---------------------------------------------------------------------------
# Pallas kernel: (tm, K) bf16 x (K, N_pad) bf16 -> f32 acc + bias + activation.
# ---------------------------------------------------------------------------
def _conv_matmul_kernel(x_ref, w_ref, b_ref, o_ref, *, activation):
    acc = jnp.dot(x_ref[...], w_ref[...], preferred_element_type=jnp.float32)
    acc = acc + b_ref[...]
    acc = _apply_activation(acc, activation)
    o_ref[...] = acc.astype(o_ref.dtype)


def _pallas_conv_matmul(patches, w_mat, bias, activation, *, tm=256):
    """patches: (M, K), w_mat: (K, N) f32, bias: (N,) f32 -> (M, N) f32."""
    M, K = patches.shape
    n = w_mat.shape[1]
    n_pad = max(_LANE, pl.cdiv(n, _LANE) * _LANE)

    # Lane-dense output: zero-pad channel dim of weight/bias up to 128 multiple.
    if n_pad != n:
        w_mat = jnp.pad(w_mat, ((0, 0), (0, n_pad - n)))
        bias = jnp.pad(bias, (0, n_pad - n))

    # bf16 operands for the MXU; accumulation / bias / activation stay in f32.
    patches = patches.astype(jnp.bfloat16)
    w_mat = w_mat.astype(jnp.bfloat16)
    bias2d = bias.reshape(1, n_pad).astype(jnp.float32)

    # Keep >= 2 grid steps when there is enough work (v7x has 2 TensorCores),
    # and never make the tile larger than (rounded-up) M.
    if M > 32 and pl.cdiv(M, tm) < 2:
        tm = max(16, -(-((M + 1) // 2) // 16) * 16)
    tm = min(tm, max(16, -(-M // 16) * 16))
    grid_m = pl.cdiv(M, tm)

    # Explicit VMEM budget: double-buffered patches/out tiles + weight + bias.
    need = 2 * (tm * K * 2 + tm * n_pad * 4 + K * n_pad * 2 + n_pad * 4)
    vmem_limit = int(min(64 << 20, max(32 << 20, 2 * need + (2 << 20))))

    kernel = functools.partial(_conv_matmul_kernel, activation=activation)
    out = pl.pallas_call(
        kernel,
        out_shape=jax.ShapeDtypeStruct((M, n_pad), jnp.float32),
        grid_spec=pltpu.PrefetchScalarGridSpec(
            num_scalar_prefetch=0,
            grid=(grid_m,),
            in_specs=[
                pl.BlockSpec((tm, K), lambda i: (i, 0)),      # patches tile
                pl.BlockSpec((K, n_pad), lambda i: (0, 0)),   # weight (grid-invariant)
                pl.BlockSpec((1, n_pad), lambda i: (0, 0)),   # bias row (grid-invariant)
            ],
            out_specs=pl.BlockSpec((tm, n_pad), lambda i: (i, 0)),
        ),
        compiler_params=pltpu.CompilerParams(
            dimension_semantics=("parallel",),
            vmem_limit_bytes=vmem_limit),
    )(patches, w_mat, bias2d)

    if n_pad != n:
        out = out[:, :n]
    return out


# ---------------------------------------------------------------------------
# Glue: NHWC im2col (no large transpose) + parameter setup.
# ---------------------------------------------------------------------------
def _auto_padding(kernel_size, padding):
    if "same" in padding:
        return (kernel_size - 1) // 2
    return 0


def _im2col_nhwc(x_nhwc, kh, kw, stride, pad):
    """x_nhwc: (N, H, W, C) -> patches (N*Ho*Wo, kh*kw*C), Ho, Wo.

    K ordering is (ki*kw + kj)*C + c; the weight matrix is reordered to match.
    The (M, K) layout is a pure reshape of the concatenated window slices.
    """
    if pad > 0:
        x_nhwc = jnp.pad(x_nhwc, ((0, 0), (pad, pad), (pad, pad), (0, 0)))
    n, h, w, c = x_nhwc.shape
    ho = (h - kh) // stride + 1
    wo = (w - kw) // stride + 1
    if kh == 1 and kw == 1 and stride == 1:
        return x_nhwc.reshape(n * ho * wo, c), ho, wo
    cols = []
    for i in range(kh):
        for j in range(kw):
            cols.append(
                x_nhwc[:, i:i + stride * ho:stride, j:j + stride * wo:stride, :])
    patches = jnp.concatenate(cols, axis=-1).reshape(n * ho * wo, kh * kw * c)
    return patches, ho, wo


class Conv2DPallas:
    """Pallas equivalent of the torch Conv2D(in_ch, out_ch, ...) module."""

    def __init__(self, in_ch, out_ch, kernel_size=1, stride=1,
                 padding="valid", activation="valid", bn=False, groups=1,
                 bias=True, key=None, tm=256):
        assert key is not None
        assert groups == 1  # TODO(synk): grouped convolution not implemented.
        self.in_ch, self.out_ch = in_ch, out_ch
        self.k, self.stride = kernel_size, stride
        self.pad = _auto_padding(kernel_size, padding)
        self.activation = activation.lower() if isinstance(activation, str) else "valid"
        # TODO(synk): 'softmax'/'logsoftmax' activations would need masking of
        # the zero-padded channels inside the kernel; not implemented.
        self.bn = bn
        self.tm = tm
        use_bias = (not bn) and bias

        kw_, kb_ = jax.random.split(key)
        fan_in = in_ch * kernel_size * kernel_size
        bound = 1.0 / math.sqrt(fan_in)
        self.weight = jax.random.uniform(
            kw_, (out_ch, in_ch, kernel_size, kernel_size),
            minval=-bound, maxval=bound, dtype=jnp.float32)
        if use_bias:
            self.bias = jax.random.uniform(
                kb_, (out_ch,), minval=-bound, maxval=bound, dtype=jnp.float32)
        else:
            self.bias = jnp.zeros((out_ch,), jnp.float32)

        if bn:
            # Fresh BatchNorm2d parameters/running stats, inference mode.
            # TODO(synk): training-mode BatchNorm (batch statistics) not implemented.
            self.bn_eps = 1e-5
            self.bn_gamma = jnp.ones((out_ch,), jnp.float32)
            self.bn_beta = jnp.zeros((out_ch,), jnp.float32)
            self.bn_mean = jnp.zeros((out_ch,), jnp.float32)
            self.bn_var = jnp.ones((out_ch,), jnp.float32)

    def _folded_weight_bias(self):
        # (K, out_ch) weight in (ki, kj, c) K-ordering to match _im2col_nhwc,
        # with inference-mode BatchNorm folded in (general fold).
        w_mat = jnp.transpose(self.weight, (2, 3, 1, 0)).reshape(
            self.k * self.k * self.in_ch, self.out_ch)
        bias = self.bias
        if self.bn:
            scale = self.bn_gamma / jnp.sqrt(self.bn_var + self.bn_eps)
            w_mat = w_mat * scale[None, :]
            bias = (bias - self.bn_mean) * scale + self.bn_beta
        return w_mat, bias

    def __call__(self, x):
        # x: (N, C, H, W) f32 -> (N, out_ch, Ho, Wo) f32.
        n = x.shape[0]
        # NHWC internally; cast to bf16 up-front so the materialized patches
        # matrix (the largest tensor in the pipeline) is half-width in HBM.
        x_nhwc = jnp.transpose(x, (0, 2, 3, 1)).astype(jnp.bfloat16)
        patches, ho, wo = _im2col_nhwc(x_nhwc, self.k, self.k, self.stride, self.pad)
        w_mat, bias = self._folded_weight_bias()
        out = _pallas_conv_matmul(patches, w_mat, bias, self.activation, tm=self.tm)
        # TODO(synk): a stack of these convs should stay NHWC end-to-end; the
        # final transpose is kept only to match the torch module's NCHW output.
        return out.reshape(n, ho, wo, self.out_ch).transpose(0, 3, 1, 2)


# ---------------------------------------------------------------------------
# Reference (plain JAX / XLA conv) with matching bf16 operand rounding.
# ---------------------------------------------------------------------------
def _ref_conv(module, x):
    w_mat, bias = module._folded_weight_bias()
    k, cin, cout = module.k, module.in_ch, module.out_ch
    w_oihw = w_mat.reshape(k, k, cin, cout).transpose(3, 2, 0, 1)
    xb = x.astype(jnp.bfloat16).astype(jnp.float32)
    wb = w_oihw.astype(jnp.bfloat16).astype(jnp.float32)
    out = lax.conv_general_dilated(
        xb, wb, window_strides=(module.stride, module.stride),
        padding=((module.pad, module.pad), (module.pad, module.pad)),
        dimension_numbers=("NCHW", "OIHW", "NCHW"),
        preferred_element_type=jnp.float32)
    out = out + bias[None, :, None, None]
    return _apply_activation(out, module.activation)


if __name__ == "__main__":
    key = jax.random.PRNGKey(0)
    kx, k1, k2, k3 = jax.random.split(key, 4)

    # Small NCHW input consistent with the module's conv-over-board usage.
    x = jax.random.normal(kx, (2, 4, 16, 16), dtype=jnp.float32)

    # Case 1: module defaults -> 1x1 conv, stride 1, 'valid' padding,
    #         bias=True, no BN, no activation.
    m1 = Conv2DPallas(4, 8, kernel_size=1, stride=1, padding="valid",
                      activation="valid", bn=False, key=k1)
    y1 = m1(x)
    jax.block_until_ready(y1)
    assert y1.shape == (2, 8, 16, 16)
    assert jnp.allclose(y1, _ref_conv(m1, x), atol=1e-2, rtol=1e-2)

    # Case 2: 3x3 'same' conv + relu (padding, larger K, activation).
    m2 = Conv2DPallas(4, 8, kernel_size=3, stride=1, padding="same",
                      activation="relu", bn=False, key=k2)
    y2 = m2(x)
    jax.block_until_ready(y2)
    assert y2.shape == (2, 8, 16, 16)
    assert jnp.allclose(y2, _ref_conv(m2, x), atol=1e-2, rtol=1e-2)

    # Case 3: 3x3 'same' conv + inference-mode BatchNorm + tanh.
    m3 = Conv2DPallas(4, 8, kernel_size=3, stride=1, padding="same",
                      activation="tanh", bn=True, key=k3)
    y3 = m3(x)
    jax.block_until_ready(y3)
    assert y3.shape == (2, 8, 16, 16)
    assert jnp.allclose(y3, _ref_conv(m3, x), atol=1e-2, rtol=1e-2)

    print("KERNEL_OK")
</pallas_src>

<mosaic_0001>
module attributes {stable_mosaic.version = 11 : i64} {
  func.func @_conv_matmul_kernel(%arg0: i32, %arg1: memref<256x4xbf16, #tpu.memory_space<vmem>>, %arg2: memref<4x128xbf16, #tpu.memory_space<vmem>>, %arg3: memref<1x128xf32, #tpu.memory_space<vmem>>, %arg4: memref<256x128xf32, #tpu.memory_space<vmem>>) attributes {dimension_semantics = [#tpu.dimension_semantics<parallel>], iteration_bounds = array<i64: 2>, scalar_prefetch = 0 : i64, scratch_operands = 0 : i64, tpu.core_type = #tpu.core_type<tc>, window_params = [{transform_indices = @transform_0, window_bounds = array<i64: 256, 4>}, {pipeline_mode = #tpu.pipeline_mode<synchronous>, transform_indices = @transform_1, window_bounds = array<i64: 4, 128>}, {pipeline_mode = #tpu.pipeline_mode<synchronous>, transform_indices = @transform_2, window_bounds = array<i64: 1, 128>}, {transform_indices = @transform_3, window_bounds = array<i64: 256, 128>}]} {
    %c0 = arith.constant 0 : index
    %c0_0 = arith.constant 0 : index
    %0 = vector.load %arg1[%c0, %c0_0] : memref<256x4xbf16, #tpu.memory_space<vmem>>, vector<256x4xbf16>
    %c0_1 = arith.constant 0 : index
    %c0_2 = arith.constant 0 : index
    %1 = vector.load %arg2[%c0_1, %c0_2] : memref<4x128xbf16, #tpu.memory_space<vmem>>, vector<4x128xbf16>
    %cst = arith.constant dense<0.000000e+00> : vector<256x128xf32>
    %2 = tpu.matmul %0, %1, %cst {dimension_numbers = #tpu.dot_dimension_numbers<[1], [0], [0], [1], [0, 0, 1, 1], [], []>} : vector<256x4xbf16>, vector<4x128xbf16>, vector<256x128xf32> -> vector<256x128xf32>
    %c0_3 = arith.constant 0 : index
    %c0_4 = arith.constant 0 : index
    %3 = vector.load %arg3[%c0_3, %c0_4] : memref<1x128xf32, #tpu.memory_space<vmem>>, vector<1x128xf32>
    %4 = vector.broadcast %3 : vector<1x128xf32> to vector<256x128xf32>
    %5 = arith.addf %2, %4 : vector<256x128xf32>
    %c0_5 = arith.constant 0 : index
    %c0_6 = arith.constant 0 : index
    %6 = vector.load %arg4[%c0_5, %c0_6] : memref<256x128xf32, #tpu.memory_space<vmem>>, vector<256x128xf32>
    tpu.vector_store %arg4[%c0_5, %c0_6], %5 {strides = array<i32>} : memref<256x128xf32, #tpu.memory_space<vmem>>, vector<256x128xf32>,
    return
  }
  func.func @transform_0(%arg0: i32) -> (i32, i32) {
    %c0_i32 = arith.constant 0 : i32
    %c0_i32_0 = arith.constant 0 : i32
    return %arg0, %c0_i32 : i32, i32
  }
  func.func @transform_1(%arg0: i32) -> (i32, i32) {
    %c0_i32 = arith.constant 0 : i32
    %c0_i32_0 = arith.constant 0 : i32
    %c0_i32_1 = arith.constant 0 : i32
    return %c0_i32, %c0_i32_0 : i32, i32
  }
  func.func @transform_2(%arg0: i32) -> (i32, i32) {
    %c0_i32 = arith.constant 0 : i32
    %c0_i32_0 = arith.constant 0 : i32
    %c0_i32_1 = arith.constant 0 : i32
    return %c0_i32, %c0_i32_0 : i32, i32
  }
  func.func @transform_3(%arg0: i32) -> (i32, i32) {
    %c0_i32 = arith.constant 0 : i32
    %c0_i32_0 = arith.constant 0 : i32
    return %arg0, %c0_i32 : i32, i32
  }
}

</mosaic_0001>

<bundles_post_ra>
// kernel: tpu_custom_call.1
= control target key start
LH: loop header
LB: loop body
LE: loop exit
PB: predicated region body
PF: predicated region fallthrough
CT: control target
= control target key end

     0   :  { %8 = vsyncpa [#allocation3], 0  ;;  %s1072_s0 = inlined_call_operand.vmem [shape: bf16[512,4], index: 0, kind: input, shape index: {}]   ;;  %s1073_s1 = inlined_call_operand.vmem [shape: bf16[4,128], index: 1, kind: input, shape index: {}]   ;;  %s1074_s2 = inlined_call_operand.vmem [shape: f32[1,128], index: 2, kind: input, shape index: {}]   ;;  %s1075_s3 = inlined_call_operand.hbm [shape: f32[512,128], index: 3, kind: output, shape index: {}]  }
   0x1   :  { %10 = vsyncpa [#allocation3 + $0x1], 0  ;;  %s858_s12 = smov 0   ;;  %s860_s13 = smov 0  }
   0x2   :  { %s862_s14 = smov 0   ;;  %s864_s15 = smov 0  }
   0x3 LB: > { %s879_s16 = sadd.s32 4294967295, %s833_s15   ;;  %s615_s17 = sadd.s32 4294967294, %s833_s15   ;;  %s833_s15 = sphi %s864_s15, %s1081_s15   ;;  %s829_s14 = sphi %s862_s14, %s1080_s14   ;;  %s825_s13 = sphi %s860_s13, %s1079_s13   ;;  %s821_s12 = sphi %s858_s12, %s1078_s12  }
   0x4   : > { %s883_s18 = sadd.s32 1, %s833_s15   ;;  %s91_s19 = sadd.s32 1, %s829_s14 }
   0x5   : > { %s88_s20 = ssub.s32 %s833_s15, %s883_s18  ;;  %p101_p0 = scmp.ne.s32.totalorder %s829_s14, %s825_s13 }
   0x6   : > { %p89_p1 = scmp.eq.s32.totalorder %s88_s20, 0  ;;  %p102_p2 = scmp.eq.s32.totalorder %s879_s16, 1 }
   0x7   : > { %p107_p3 = scmp.ne.s32.totalorder %s825_s13, %s821_s12  ;;  %p108_p4 = scmp.eq.s32.totalorder %s615_s17, 1 }
   0x8   : > { %s894_s21 = scalar_select %p89_p1, %s829_s14, %s91_s19  }
   0x9   : > { %p896_p5 = por %p102_p2, %p101_p0  ;;  %p900_p6 = por %p108_p4, %p107_p3 }
   0xa   : > { %p618_p7 = scmp.ge.s32.totalorder %s833_s15, 1  ;;  %p141_p8 = scmp.lt.s32.totalorder %s833_s15, 3 }
   0xc   : > { %p142_p9 = pnand %p618_p7, %p141_p8 }
   0xd   : > { %s620_s26 = sshll.u32 (!%p142_p9), %s879_s16, 5  ;;  %s162_s4 = sand.u32 (!%p142_p9), 1, %s825_s13  }
   0xe   : > { %145 = sbr.rel (%p142_p9) target bundleno = 264 (0x108), region = 32  ;;  %p166_p10 = scmp.lt.s32.totalorder (!%p142_p9), %s620_s26, 63 }
   0xf   : > { %s619_s5 = sshll.u32 (!%p142_p9), %s162_s4, 8  ;;  %s660_s9 = sshll.u32 (!%p142_p9), %s879_s16, 12 }
  0x10   : > { %s957_s8 = scalar_lea.vmem (!%p142_p9), [#allocation2], %s619_s5  ;;  %s1022_s16 = scalar_lea.hbm (!%p142_p9), %s1075_s3, %s660_s9 }
  0x11   : > { %s553_s10 = sshll.u32 (!%p142_p9), %s957_s8, 4  ;;  %s1032_s19 = scalar_lea.sflag (!%p142_p9), [#allocation3], %s162_s4  ;;  %s1024_s10 = int_to_ptr.vmem [resolvable:$true] %s553_s10 }
  0x12   : > { %s773_s20 = scalar_lea.vmem (!%p142_p9), %s1024_s10, 4096  ;;  %s835_s24 = smov (!%p142_p9), [#allocation2]  }
  0x13   : > { %v205_v0 = vld [vmem:[%s1073_s1] sm:$0x3]  ;;  %vm342_vm0 = vcmask 1041408   ;;  %s1083_s26 = smov (!%p166_p10, %s620_s26), 63  ;;  %vm293_vm1 = vcmask 31744   ;;  %p774_p11 = scmp.ne.s32.totalorder %s1024_s10, %s773_s20 }
  0x14   : > { %714 = vmatprep.subr.msk.bf16.mxu0 %vm342_vm0, %v205_v0  ;;  %715 = vmatprep.subr.msk.bf16.mxu1 %vm342_vm0, %v205_v0  ;;  %v344_v1 = vsel %vm342_vm0, %v205_v0, 0  ;;  %s621_s27 = sshll.u32 %s1083_s26, 2  ;;  %v953_v18 = vld [vmem:[%s1074_s2] ss:$0 sm:$0xff]  ;;  %s777_s25 = sshll.u32 %s835_s24, 4  ;;  %s778_s25 = int_to_ptr.vmem [resolvable:$false] %s777_s25 }
  0x15   : > { %679 = vmatpush3.bf16.msra.mxu0 %v344_v1  ;;  %713 = vmatpush3.bf16.msra.mxu1 %v344_v1  ;;  %s913_s30 = scalar_lea.vmem %s1072_s0, %s621_s27  ;;  %p775_p12 = pnand %p774_p11, %p896_p5 }
  0x16   : > { %v757_v2 = vld [vmem:[%s913_s30] sm:$0xff]   ;;  %v759_v4 = vld [vmem:[%s913_s30 + $0x8] sm:$0xff]   ;;  %v761_v6 = vld [vmem:[%s913_s30 + $0x10] sm:$0xff]   ;;  %s779_s26 = scalar_lea.vmem %s778_s25, 8192  ;;  %p780_p0 = scmp.lt.s32.totalorder %s1024_s10, %s778_s25 }
  0x17   : > { %v758_v3 = vld [vmem:[%s913_s30 + $0x40] sm:$0xff]   ;;  %680 = vmatprep.mubr.msk.bf16.mxu0 %vm293_vm1, %v757_v2  ;;  %v760_v5 = vld [vmem:[%s913_s30 + $0x48] sm:$0xff]   ;;  %v762_v7 = vld [vmem:[%s913_s30 + $0x50] sm:$0xff]   ;;  %p776_p13 = pneg %p775_p12  ;;  %p781_p1 = scmp.lt.s32.totalorder %s779_s26, %s773_s20 }
  0x18   : > { %696 = vmatprep.mubr.msk.bf16.mxu1 %vm293_vm1, %v758_v3  ;;  %681 = vmatmul.mubr.msk.bf16.vlgmr.msra.gmra.mxu0 %vm293_vm1, %v759_v4  ;;  %v763_v8 = vld [vmem:[%s913_s30 + $0x18] sm:$0xff]   ;;  %v765_v10 = vld [vmem:[%s913_s30 + $0x20] sm:$0xff]   ;;  %v767_v12 = vld [vmem:[%s913_s30 + $0x28] sm:$0xff]  }
  0x19   : > { %697 = vmatmul.mubr.msk.bf16.vlgmr.msra.gmra.mxu1 %vm293_vm1, %v760_v5  ;;  %684 = vmatprep.mubr.msk.bf16.mxu0 %vm293_vm1, %v761_v6  ;;  %v764_v9 = vld [vmem:[%s913_s30 + $0x58] sm:$0xff]   ;;  %v766_v11 = vld [vmem:[%s913_s30 + $0x60] sm:$0xff]   ;;  %v768_v13 = vld [vmem:[%s913_s30 + $0x68] sm:$0xff]   ;;  %p782_p2 = por %p781_p1, %p780_p0 }
  0x1a   : > { %700 = vmatprep.mubr.msk.bf16.mxu1 %vm293_vm1, %v762_v7  ;;  %v769_v14 = vld [vmem:[%s913_s30 + $0x30] sm:$0xff]   ;;  %v771_v16 = vld [vmem:[%s913_s30 + $0x38] sm:$0xff]  }
  0x1b   : > { %v770_v15 = vld [vmem:[%s913_s30 + $0x70] sm:$0xff]   ;;  %v772_v17 = vld [vmem:[%s913_s30 + $0x78] sm:$0xff]   ;;  %p783_p3 = pnand %p782_p2, %p776_p13 }
  0x20   : > { %685 = vmatmul.mubr.msk.bf16.gmra.mxu0 %vm293_vm1, %v763_v8 }
  0x21   : > { %701 = vmatmul.mubr.msk.bf16.gmra.mxu1 %vm293_vm1, %v764_v9  ;;  %688 = vmatprep.mubr.msk.bf16.mxu0 %vm293_vm1, %v765_v10 }
  0x22   : > { %704 = vmatprep.mubr.msk.bf16.mxu1 %vm293_vm1, %v766_v11 }
  0x28   : > { %689 = vmatmul.mubr.msk.bf16.gmra.mxu0 %vm293_vm1, %v767_v12 }
  0x29   : > { %705 = vmatmul.mubr.msk.bf16.gmra.mxu1 %vm293_vm1, %v768_v13  ;;  %692 = vmatprep.mubr.msk.bf16.mxu0 %vm293_vm1, %v769_v14 }
  0x2a   : > { %708 = vmatprep.mubr.msk.bf16.mxu1 %vm293_vm1, %v770_v15 }
  0x30   : > { %693 = vmatmul.mubr.msk.bf16.gmra.mxu0 %vm293_vm1, %v771_v16 }
  0x31   : > { %709 = vmatmul.mubr.msk.bf16.gmra.mxu1 %vm293_vm1, %v772_v17 }
  0xd8   : > { %v682_v19 = vpop.f32.mrf.mxu0 }
  0xd9   : > { %v389_v20 = vadd.f32 %v682_v19, %v953_v18  ;;  %v698_v21 = vpop.f32.mrf.mxu1 }
  0xda   : > { %v453_v22 = vadd.f32 %v698_v21, %v953_v18  ;;  %v380_v23 = vpop.f32.mrf.mxu0 }
  0xdb   : > { %509 = vst [vmem:[%s957_s8 + $0x10] sm:$0xff] %v389_v20  ;;  %v381_v24 = vadd.f32 %v953_v18, %v380_v23  ;;  %v444_v25 = vpop.f32.mrf.mxu1 }
  0xdc   : > { %525 = vst [vmem:[%s957_s8 + $0x90] sm:$0xff] %v453_v22  ;;  %v445_v26 = vadd.f32 %v953_v18, %v444_v25  ;;  %v683_v27 = vpop.f32.mrf.mxu0 }
  0xdd   : > { %507 = vst [vmem:[%s957_s8] sm:$0xff] %v381_v24  ;;  %v392_v28 = vadd.f32 %v683_v27, %v953_v18  ;;  %v699_v29 = vpop.f32.mrf.mxu1 }
  0xde   : > { %523 = vst [vmem:[%s957_s8 + $0x80] sm:$0xff] %v445_v26  ;;  %v456_v30 = vadd.f32 %v699_v29, %v953_v18  ;;  %v383_v31 = vpop.f32.mrf.mxu0 }
  0xdf   : > { %510 = vst [vmem:[%s957_s8 + $0x18] sm:$0xff] %v392_v28  ;;  %v384_v32 = vadd.f32 %v953_v18, %v383_v31  ;;  %v447_v33 = vpop.f32.mrf.mxu1 }
  0xe0   : > { %526 = vst [vmem:[%s957_s8 + $0x98] sm:$0xff] %v456_v30  ;;  %v448_v34 = vadd.f32 %v953_v18, %v447_v33  ;;  %v686_v35 = vpop.f32.mrf.mxu0 }
  0xe1   : > { %508 = vst [vmem:[%s957_s8 + $0x8] sm:$0xff] %v384_v32  ;;  %v405_v36 = vadd.f32 %v686_v35, %v953_v18  ;;  %v702_v37 = vpop.f32.mrf.mxu1 }
  0xe2   : > { %524 = vst [vmem:[%s957_s8 + $0x88] sm:$0xff] %v448_v34  ;;  %v469_v38 = vadd.f32 %v702_v37, %v953_v18  ;;  %v396_v39 = vpop.f32.mrf.mxu0 }
  0xe3   : > { %513 = vst [vmem:[%s957_s8 + $0x30] sm:$0xff] %v405_v36  ;;  %v397_v40 = vadd.f32 %v953_v18, %v396_v39  ;;  %v460_v41 = vpop.f32.mrf.mxu1 }
  0xe4   : > { %529 = vst [vmem:[%s957_s8 + $0xb0] sm:$0xff] %v469_v38  ;;  %v461_v42 = vadd.f32 %v953_v18, %v460_v41  ;;  %v687_v43 = vpop.f32.mrf.mxu0 }
  0xe5   : > { %511 = vst [vmem:[%s957_s8 + $0x20] sm:$0xff] %v397_v40  ;;  %v408_v44 = vadd.f32 %v687_v43, %v953_v18  ;;  %v703_v45 = vpop.f32.mrf.mxu1 }
  0xe6   : > { %527 = vst [vmem:[%s957_s8 + $0xa0] sm:$0xff] %v461_v42  ;;  %v472_v46 = vadd.f32 %v703_v45, %v953_v18  ;;  %v399_v47 = vpop.f32.mrf.mxu0 }
  0xe7   : > { %514 = vst [vmem:[%s957_s8 + $0x38] sm:$0xff] %v408_v44  ;;  %v400_v48 = vadd.f32 %v953_v18, %v399_v47  ;;  %v463_v49 = vpop.f32.mrf.mxu1 }
  0xe8   : > { %530 = vst [vmem:[%s957_s8 + $0xb8] sm:$0xff] %v472_v46  ;;  %v464_v50 = vadd.f32 %v953_v18, %v463_v49  ;;  %v690_v51 = vpop.f32.mrf.mxu0 }
  0xe9   : > { %512 = vst [vmem:[%s957_s8 + $0x28] sm:$0xff] %v400_v48  ;;  %v421_v52 = vadd.f32 %v690_v51, %v953_v18  ;;  %v706_v53 = vpop.f32.mrf.mxu1 }
  0xea   : > { %528 = vst [vmem:[%s957_s8 + $0xa8] sm:$0xff] %v464_v50  ;;  %v485_v54 = vadd.f32 %v706_v53, %v953_v18  ;;  %v412_v55 = vpop.f32.mrf.mxu0 }
  0xeb   : > { %517 = vst [vmem:[%s957_s8 + $0x50] sm:$0xff] %v421_v52  ;;  %v413_v56 = vadd.f32 %v953_v18, %v412_v55  ;;  %v476_v57 = vpop.f32.mrf.mxu1 }
  0xec   : > { %533 = vst [vmem:[%s957_s8 + $0xd0] sm:$0xff] %v485_v54  ;;  %v477_v58 = vadd.f32 %v953_v18, %v476_v57  ;;  %v691_v59 = vpop.f32.mrf.mxu0 }
  0xed   : > { %515 = vst [vmem:[%s957_s8 + $0x40] sm:$0xff] %v413_v56  ;;  %v424_v60 = vadd.f32 %v691_v59, %v953_v18  ;;  %v707_v61 = vpop.f32.mrf.mxu1 }
  0xee   : > { %531 = vst [vmem:[%s957_s8 + $0xc0] sm:$0xff] %v477_v58  ;;  %v488_v62 = vadd.f32 %v707_v61, %v953_v18  ;;  %v415_v63 = vpop.f32.mrf.mxu0 }
  0xef   : > { %518 = vst [vmem:[%s957_s8 + $0x58] sm:$0xff] %v424_v60  ;;  %v416_v0 = vadd.f32 %v953_v18, %v415_v63  ;;  %v479_v1 = vpop.f32.mrf.mxu1 }
  0xf0   : > { %534 = vst [vmem:[%s957_s8 + $0xd8] sm:$0xff] %v488_v62  ;;  %v480_v2 = vadd.f32 %v953_v18, %v479_v1  ;;  %v694_v3 = vpop.f32.mrf.mxu0 }
  0xf1   : > { %516 = vst [vmem:[%s957_s8 + $0x48] sm:$0xff] %v416_v0  ;;  %v437_v4 = vadd.f32 %v694_v3, %v953_v18  ;;  %v710_v5 = vpop.f32.mrf.mxu1 }
  0xf2   : > { %532 = vst [vmem:[%s957_s8 + $0xc8] sm:$0xff] %v480_v2  ;;  %v501_v6 = vadd.f32 %v710_v5, %v953_v18  ;;  %v428_v7 = vpop.f32.mrf.mxu0 }
  0xf3   : > { %521 = vst [vmem:[%s957_s8 + $0x70] sm:$0xff] %v437_v4  ;;  %v429_v8 = vadd.f32 %v953_v18, %v428_v7  ;;  %v492_v9 = vpop.f32.mrf.mxu1 }
  0xf4   : > { %537 = vst [vmem:[%s957_s8 + $0xf0] sm:$0xff] %v501_v6  ;;  %v493_v10 = vadd.f32 %v953_v18, %v492_v9  ;;  %v695_v11 = vpop.f32.mrf.mxu0 }
  0xf5   : > { %519 = vst [vmem:[%s957_s8 + $0x60] sm:$0xff] %v429_v8  ;;  %v440_v12 = vadd.f32 %v695_v11, %v953_v18  ;;  %v711_v13 = vpop.f32.mrf.mxu1 }
  0xf6   : > { %535 = vst [vmem:[%s957_s8 + $0xe0] sm:$0xff] %v493_v10  ;;  %v504_v14 = vadd.f32 %v711_v13, %v953_v18  ;;  %v431_v15 = vpop.f32.mrf.mxu0 }
  0xf7   : > { %522 = vst [vmem:[%s957_s8 + $0x78] sm:$0xff] %v440_v12  ;;  %v432_v16 = vadd.f32 %v953_v18, %v431_v15  ;;  %v495_v17 = vpop.f32.mrf.mxu1 }
  0xf8   : > { %538 = vst [vmem:[%s957_s8 + $0xf8] sm:$0xff] %v504_v14  ;;  %v496_v19 = vadd.f32 %v953_v18, %v495_v17 }
  0xf9   : > { %520 = vst [vmem:[%s957_s8 + $0x68] sm:$0xff] %v432_v16 }
  0xfa   : > { %536 = vst [vmem:[%s957_s8 + $0xe8] sm:$0xff] %v496_v19 }
  0xfb   : > { %786 = shalt.err (!%p783_p3)
}
  0xfc   : > { %s787_s27 = scalar_lea.hbm %s1022_s16, 4096  ;;  %s791_s30 = scalar_lea.hbm %s1075_s3, 8192 }
  0xfd   : > { %p788_p4 = scmp.ne.s32.totalorder %s1022_s16, %s787_s27  ;;  %p792_p9 = scmp.lt.s32.totalorder %s1022_s16, %s1075_s3 }
  0xfe   : > { %p793_p10 = scmp.lt.s32.totalorder %s791_s30, %s787_s27 }
  0xff   : > { %p789_p7 = pnand %p788_p4, %p896_p5 }
 0x100   : > { %p794_p11 = por %p793_p10, %p792_p9 }
 0x101   : > { %p790_p8 = pneg %p789_p7 }
 0x103   : > { %p795_p12 = pnand %p794_p11, %p790_p8 }
 0x105   : > { %798 = shalt.err (!%p795_p12)
}
 0x106   : > { %s836_s6 = smov 128   ;;  %s837_s7 = smov 8  }
 0x107   : > { %716 = dma.vmem_to_hbm [thread:$0]  (%p896_p5), %s1024_s10, 4096, %s1022_s16, %s1032_s19, %s836_s6, %s836_s6, %s837_s7  }
 0x108 PF: > { %p722_p13 = scmp.ge.s32.totalorder %s833_s15, 2  ;;  %s568_s8 = sand.u32 1, %s821_s12  }
 0x109   : > { %s569_s9 = scalar_lea.sflag [#allocation3], %s568_s8 }
 0x10a   : > { %p719_p0 = pnand %p722_p13, %p900_p6 }
 0x10c   : > { %p720_p1 = pneg %p719_p0 }
 0x10e   : > { %816 = dma.done.wait (%p720_p1), %s569_s9, 4096  }
 0x10f   : > { %818 = vsyncadd (%p720_p1), %s569_s9, 4294963200  ;;  %p13_p2 = scmp.ge.s32.totalorder %s883_s18, 4   ;;  %s1078_s12 = smov %s825_s13 }
 0x110   : > { %s1079_s13 = smov %s829_s14  ;;  %s1080_s14 = smov %s894_s21 }
 0x111   : > { %s1081_s15 = smov %s883_s18  ;;  %15 = sbr.rel (!%p13_p2) target bundleno = 3 (0x3), region = 67 }
 0x116   :  { %574 = vsyncpa [#allocation3], 1 }
 0x117   :  { %576 = vsyncpa [#allocation3 + $0x1], 1 }

</bundles_post_ra>
